<compile_context>
chip_gen: v7x
topology: tpu7x:2x2x1
jax: 0.10.0
libtpu: 0.0.40
codegen_flags: <defaults>
</compile_context>

<pallas_src>
import functools
import math

import jax
import jax.numpy as jnp
from jax import lax
from jax.experimental import pallas as pl
from jax.experimental.pallas import tpu as pltpu


def _round_up(x, m):
    return (x + m - 1) // m * m


def _pick_tile(dim, candidates):
    """Largest lane-aligned candidate that divides `dim`."""
    for t in candidates:
        if dim % t == 0:
            return t
    return None


# ----------------------------------------------------------------------------
# Kernel: K-tiled matmul with f32 accumulator; gain + bias + act in epilogue.
# ----------------------------------------------------------------------------
def _fc_kernel(x_ref, w_ref, b_ref, o_ref, acc_ref, *,
               weight_gain, bias_gain, activation, mxu_dtype):
    k = pl.program_id(2)

    @pl.when(k == 0)
    def _():
        acc_ref[...] = jnp.zeros_like(acc_ref)

    a = x_ref[...].astype(mxu_dtype)          # [tm, tk]
    w = w_ref[...].astype(mxu_dtype)          # [tn, tk]  (weight kept as [N, K])
    acc_ref[...] += lax.dot_general(
        a, w,
        dimension_numbers=(((1,), (1,)), ((), ())),   # contract K of both
        preferred_element_type=jnp.float32)

    @pl.when(k == pl.num_programs(2) - 1)
    def _():
        out = acc_ref[...] * weight_gain
        out = out + b_ref[...].astype(jnp.float32) * bias_gain
        if activation == "relu":
            out = jnp.maximum(out, 0.0)
        o_ref[...] = out.astype(o_ref.dtype)


# ----------------------------------------------------------------------------
# Wrapper: tile-plan selection, minimal padding, pallas_call.
# ----------------------------------------------------------------------------
def fully_connected_forward(x, weight, bias=None, *, activation="linear",
                            lr_multiplier=1.0, mxu_dtype=None):
    """x: [M, K]; weight: [N, K] (torch layout [out, in]); bias: [N] or None.

    Returns [M, N], matching FullyConnectedLayer.forward semantics.
    """
    if activation not in ("linear", "relu"):
        raise ValueError(f"unsupported activation: {activation!r}")

    M, K = x.shape
    N, Kw = weight.shape
    assert K == Kw, (K, Kw)

    out_dtype = x.dtype
    if mxu_dtype is None:
        mxu_dtype = x.dtype                   # torch: weight.to(x.dtype)

    weight_gain = float(lr_multiplier) / math.sqrt(K)
    bias_gain = float(lr_multiplier)
    if bias is None:
        b2d = jnp.zeros((1, N), out_dtype)
        bias_gain = 1.0
    else:
        b2d = bias.astype(out_dtype).reshape(1, N)

    # --- K (contraction) tiling: pad only when lane alignment requires it.
    if K % 128 == 0:
        Kp = K
        tk = _pick_tile(K, (512, 384, 256, 128))
    elif K <= 1024:
        Kp, tk = K, K                         # block == full K dim (no pad)
    else:
        Kp = _round_up(K, 128)
        tk = _pick_tile(Kp, (512, 384, 256, 128))
    if Kp != K:
        x = jnp.pad(x, ((0, 0), (0, Kp - K)))
        weight = jnp.pad(weight, ((0, 0), (0, Kp - K)))

    # --- N tiling (weight rows / output lanes).
    if N % 128 == 0:
        tn = _pick_tile(N, (1024, 512, 256, 128))
    else:
        tn = N                                # block == full N dim (no pad/slice)

    # --- M tiling: balanced tiles, sublane-packing multiple, cap 512 rows.
    pack = {1: 32, 2: 16, 4: 8}.get(jnp.dtype(x.dtype).itemsize, 8)
    n_m = max(1, -(-M // 512))
    tm = _round_up(-(-M // n_m), pack)
    grid = (pl.cdiv(M, tm), N // tn, Kp // tk)

    # --- VMEM budget (double-buffered inputs/outputs + f32 accumulator).
    xb = jnp.dtype(x.dtype).itemsize
    wb = jnp.dtype(weight.dtype).itemsize
    est = (2 * (tm * tk * xb + tn * tk * wb + tn * max(xb, 4) + tm * tn * xb)
           + tm * tn * 4)
    vmem_limit = int(min(max(4 * est, 32 * 2 ** 20), 48 * 2 ** 20))

    cost = pl.CostEstimate(
        flops=2 * M * Kp * N,
        transcendentals=0,
        bytes_accessed=M * Kp * xb + N * Kp * wb + N * xb + M * N * xb)

    kern = functools.partial(
        _fc_kernel, weight_gain=weight_gain, bias_gain=bias_gain,
        activation=activation, mxu_dtype=mxu_dtype)

    return pl.pallas_call(
        kern,
        out_shape=jax.ShapeDtypeStruct((M, N), out_dtype),
        grid_spec=pltpu.PrefetchScalarGridSpec(
            num_scalar_prefetch=0,
            grid=grid,
            in_specs=[
                pl.BlockSpec((tm, tk), lambda i, j, k: (i, k)),   # x tile
                pl.BlockSpec((tn, tk), lambda i, j, k: (j, k)),   # weight [N,K] tile
                pl.BlockSpec((1, tn), lambda i, j, k: (0, j)),    # bias tile
            ],
            out_specs=pl.BlockSpec((tm, tn), lambda i, j, k: (i, j)),
            scratch_shapes=[pltpu.VMEM((tm, tn), jnp.float32)],
        ),
        compiler_params=pltpu.CompilerParams(
            dimension_semantics=("parallel", "parallel", "arbitrary"),
            vmem_limit_bytes=vmem_limit),
        cost_estimate=cost,
    )(x, weight, b2d)


# ----------------------------------------------------------------------------
if __name__ == "__main__":
    key = jax.random.PRNGKey(0)
    kx, kw, kx2, kw2 = jax.random.split(key, 4)

    # ---- NeRF-typical small layer: 16 rows, 32 -> 64 features, lr_mult=0.01.
    M, K, N = 16, 32, 64
    lr_multiplier = 0.01
    bias_init = 1.0

    x = jax.random.normal(kx, (M, K), jnp.float32)
    # Matches torch init: weight = randn([out, in]) / lr_multiplier,
    #                     bias   = full([out], bias_init)
    weight = jax.random.normal(kw, (N, K), jnp.float32) / lr_multiplier
    bias = jnp.full((N,), bias_init, jnp.float32)

    out_lin = fully_connected_forward(x, weight, bias, activation="linear",
                                      lr_multiplier=lr_multiplier)
    out_relu = fully_connected_forward(x, weight, bias, activation="relu",
                                       lr_multiplier=lr_multiplier)
    out_lin, out_relu = jax.block_until_ready((out_lin, out_relu))

    # Pure-JAX reference mirroring the torch forward (addmm path).
    w_gain = lr_multiplier / math.sqrt(K)
    ref_lin = x @ (weight * w_gain).T + (bias * lr_multiplier)[None, :]
    ref_relu = jnp.maximum(ref_lin, 0.0)

    assert out_lin.shape == (M, N), out_lin.shape
    assert bool(jnp.all(jnp.isfinite(out_lin)))
    assert bool(jnp.allclose(out_lin, ref_lin, atol=1e-4, rtol=1e-4))
    assert bool(jnp.allclose(out_relu, ref_relu, atol=1e-4, rtol=1e-4))

    # ---- Larger layer exercising the K-reduction grid axis, N tiling, the
    #      out-of-bounds M edge block, and the bf16-MXU fast path.
    M2, K2, N2 = 260, 768, 384
    x2 = jax.random.normal(kx2, (M2, K2), jnp.float32)
    weight2 = jax.random.normal(kw2, (N2, K2), jnp.float32)
    bias2 = jnp.zeros((N2,), jnp.float32)

    out2 = fully_connected_forward(x2, weight2, bias2, activation="relu",
                                   lr_multiplier=1.0, mxu_dtype=jnp.bfloat16)
    out2 = jax.block_until_ready(out2)

    ref2 = jnp.maximum(x2 @ (weight2 / math.sqrt(K2)).T + bias2[None, :], 0.0)
    assert out2.shape == (M2, N2), out2.shape
    assert bool(jnp.all(jnp.isfinite(out2)))
    assert bool(jnp.allclose(out2, ref2, atol=5e-2, rtol=5e-2))

    print("KERNEL_OK")
</pallas_src>

<mosaic_0001>
module attributes {stable_mosaic.version = 11 : i64} {
  func.func @_fc_kernel(%arg0: i32, %arg1: i32, %arg2: i32, %arg3: memref<16x32xf32, #tpu.memory_space<vmem>>, %arg4: memref<64x32xf32, #tpu.memory_space<vmem>>, %arg5: memref<1x64xf32, #tpu.memory_space<vmem>>, %arg6: memref<16x64xf32, #tpu.memory_space<vmem>>, %arg7: memref<16x64xf32, #tpu.memory_space<vmem>>) attributes {dimension_semantics = [#tpu.dimension_semantics<parallel>, #tpu.dimension_semantics<parallel>, #tpu.dimension_semantics<arbitrary>], iteration_bounds = array<i64: 1, 1, 1>, scalar_prefetch = 0 : i64, scratch_operands = 1 : i64, tpu.core_type = #tpu.core_type<tc>, window_params = [{transform_indices = @transform_0, window_bounds = array<i64: 16, 32>}, {transform_indices = @transform_1, window_bounds = array<i64: 64, 32>}, {transform_indices = @transform_2, window_bounds = array<i64: 1, 64>}, {transform_indices = @transform_3, window_bounds = array<i64: 16, 64>}]} {
    %c0_i32 = arith.constant 0 : i32
    %0 = arith.cmpi eq, %arg2, %c0_i32 : i32
    %1 = arith.extui %0 : i1 to i32
    %c0_i32_0 = arith.constant 0 : i32
    %2 = arith.cmpi ne, %1, %c0_i32_0 : i32
    scf.if %2 {
      %cst_10 = arith.constant 0.000000e+00 : f32
      %12 = vector.broadcast %cst_10 : f32 to vector<16x64xf32>
      %c0_11 = arith.constant 0 : index
      %c0_12 = arith.constant 0 : index
      %13 = vector.load %arg7[%c0_11, %c0_12] : memref<16x64xf32, #tpu.memory_space<vmem>>, vector<16x64xf32>
      tpu.vector_store %arg7[%c0_11, %c0_12], %12 {strides = array<i32>} : memref<16x64xf32, #tpu.memory_space<vmem>>, vector<16x64xf32>,
    } else {
    }
    %c0 = arith.constant 0 : index
    %c0_1 = arith.constant 0 : index
    %3 = vector.load %arg3[%c0, %c0_1] : memref<16x32xf32, #tpu.memory_space<vmem>>, vector<16x32xf32>
    %c0_2 = arith.constant 0 : index
    %c0_3 = arith.constant 0 : index
    %4 = vector.load %arg4[%c0_2, %c0_3] : memref<64x32xf32, #tpu.memory_space<vmem>>, vector<64x32xf32>
    %c0_4 = arith.constant 0 : index
    %c0_5 = arith.constant 0 : index
    %5 = vector.load %arg7[%c0_4, %c0_5] : memref<16x64xf32, #tpu.memory_space<vmem>>, vector<16x64xf32>
    %cst = arith.constant dense<0.000000e+00> : vector<16x64xf32>
    %6 = tpu.matmul %3, %4, %cst {dimension_numbers = #tpu.dot_dimension_numbers<[1], [1], [0], [0], [0, 0, 1, 0], [], []>} : vector<16x32xf32>, vector<64x32xf32>, vector<16x64xf32> -> vector<16x64xf32>
    %7 = arith.addf %5, %6 : vector<16x64xf32>
    %c0_6 = arith.constant 0 : index
    %c0_7 = arith.constant 0 : index
    %8 = vector.load %arg7[%c0_6, %c0_7] : memref<16x64xf32, #tpu.memory_space<vmem>>, vector<16x64xf32>
    tpu.vector_store %arg7[%c0_6, %c0_7], %7 {strides = array<i32>} : memref<16x64xf32, #tpu.memory_space<vmem>>, vector<16x64xf32>,
    %c0_i32_8 = arith.constant 0 : i32
    %9 = arith.cmpi eq, %arg2, %c0_i32_8 : i32
    %10 = arith.extui %9 : i1 to i32
    %c0_i32_9 = arith.constant 0 : i32
    %11 = arith.cmpi ne, %10, %c0_i32_9 : i32
    scf.if %11 {
      %c0_10 = arith.constant 0 : index
      %c0_11 = arith.constant 0 : index
      %12 = vector.load %arg7[%c0_10, %c0_11] : memref<16x64xf32, #tpu.memory_space<vmem>>, vector<16x64xf32>
      %cst_12 = arith.constant 0.00176776689 : f32
      %13 = vector.broadcast %cst_12 : f32 to vector<16x64xf32>
      %14 = arith.mulf %12, %13 : vector<16x64xf32>
      %c0_13 = arith.constant 0 : index
      %c0_14 = arith.constant 0 : index
      %15 = vector.load %arg5[%c0_13, %c0_14] : memref<1x64xf32, #tpu.memory_space<vmem>>, vector<1x64xf32>
      %cst_15 = arith.constant 0.00999999977 : f32
      %16 = vector.broadcast %cst_15 : f32 to vector<1x64xf32>
      %17 = arith.mulf %15, %16 : vector<1x64xf32>
      %18 = vector.broadcast %17 : vector<1x64xf32> to vector<16x64xf32>
      %19 = arith.addf %14, %18 : vector<16x64xf32>
      %c0_16 = arith.constant 0 : index
      %c0_17 = arith.constant 0 : index
      %20 = vector.load %arg6[%c0_16, %c0_17] : memref<16x64xf32, #tpu.memory_space<vmem>>, vector<16x64xf32>
      tpu.vector_store %arg6[%c0_16, %c0_17], %19 {strides = array<i32>} : memref<16x64xf32, #tpu.memory_space<vmem>>, vector<16x64xf32>,
    } else {
    }
    return
  }
  func.func @transform_0(%arg0: i32, %arg1: i32, %arg2: i32) -> (i32, i32) {
    %c0_i32 = arith.constant 0 : i32
    return %arg0, %arg2 : i32, i32
  }
  func.func @transform_1(%arg0: i32, %arg1: i32, %arg2: i32) -> (i32, i32) {
    %c0_i32 = arith.constant 0 : i32
    return %arg1, %arg2 : i32, i32
  }
  func.func @transform_2(%arg0: i32, %arg1: i32, %arg2: i32) -> (i32, i32) {
    %c0_i32 = arith.constant 0 : i32
    %c0_i32_0 = arith.constant 0 : i32
    return %c0_i32, %arg1 : i32, i32
  }
  func.func @transform_3(%arg0: i32, %arg1: i32, %arg2: i32) -> (i32, i32) {
    %c0_i32 = arith.constant 0 : i32
    return %arg0, %arg1 : i32, i32
  }
}

</mosaic_0001>

<bundles_post_ra>
// kernel: tpu_custom_call.1
= control target key start
LH: loop header
LB: loop body
LE: loop exit
PB: predicated region body
PF: predicated region fallthrough
CT: control target
= control target key end

     0   :  { %vm34_vm0 = vcmask 261120   ;;  %vm19_vm1 = vcmask 523264   ;;  %v271_v6 = vmov 0.0   ;;  %s370_s0 = inlined_call_operand.vmem [shape: f32[16,32], index: 0, kind: input, shape index: {}]   ;;  %s371_s1 = inlined_call_operand.vmem [shape: f32[64,32], index: 1, kind: input, shape index: {}]   ;;  %s372_s2 = inlined_call_operand.vmem [shape: f32[1,64], index: 2, kind: input, shape index: {}]   ;;  %s373_s3 = inlined_call_operand.hbm [shape: f32[16,64], index: 3, kind: output, shape index: {}]  }
   0x1   :  { %v24_v0 = vld [vmem:[%s371_s1] sm:$0xff]  ;;  %v25_v1 = vld [vmem:[%s371_s1 + $0x8] sm:$0xff]  ;;  %v26_v2 = vld [vmem:[%s371_s1 + $0x10] sm:$0xff]  ;;  %21 = vst.msk [vmem:[#allocation2 + $0x8] sm:$0xff] %vm19_vm1, %v271_v6 }
   0x2   :  { %v219_v3 = vpack.c.bf16 %v25_v1, %v24_v0  ;;  %vm306_vm2 = vmpackc.low %vm34_vm0, %vm34_vm0  ;;  %v27_v5 = vld [vmem:[%s371_s1 + $0x18] sm:$0xff]  ;;  %20 = vst.msk [vmem:[#allocation2] sm:$0xff] %vm19_vm1, %v271_v6  ;;  %v22_v8 = vld [vmem:[%s370_s0] sm:$0xff] }
   0x3   :  { %v225_v7 = vpack.c.bf16 %v27_v5, %v26_v2 }
   0x4   :  { %221 = vmatprep.subr.msk.bf16.mxu0 %vm306_vm2, %v219_v3 }
   0x5   :  { %8 = vsyncpa [#allocation4], 0  ;;  %224 = vmatpush3.bf16.xpose.msk.msra.mxu0 %vm306_vm2, %v219_v3  ;;  %216 = vmatprep.mubr.msk.f32.mxu0 %vm34_vm0, %v22_v8  ;;  %v28_v9 = vld [vmem:[%s371_s1 + $0x20] sm:$0xff]  ;;  %v29_v10 = vld [vmem:[%s371_s1 + $0x28] sm:$0xff]  ;;  %v155_v16 = vlaneseq }
   0x6   :  { %227 = vmatprep.subr.msk.bf16.mxu0 %vm306_vm2, %v225_v7  ;;  %v231_v11 = vpack.c.bf16 %v29_v10, %v28_v9  ;;  %v30_v12 = vld [vmem:[%s371_s1 + $0x30] sm:$0xff]  ;;  %v31_v13 = vld [vmem:[%s371_s1 + $0x38] sm:$0xff]  ;;  %v23_v15 = vld [vmem:[%s370_s0 + $0x8] sm:$0xff]  ;;  %s272_s0 = smov [#allocation3]  }
   0x7   :  { %v237_v14 = vpack.c.bf16 %v31_v13, %v30_v12  ;;  %v156_v22 = vshrl.u32 %v155_v16, 7  ;;  %v152_v24 = vld [vmem:[%s372_s2] sm:$0x1]  ;;  %s169_s6 = sshll.u32 %s272_s0, 4  ;;  %s170_s6 = int_to_ptr.vmem [resolvable:$true] %s169_s6 }
   0x8   :  { %v33_v17 = vld [vmem:[#allocation2 + $0x8] sm:$0xff]  ;;  %v153_v25 = vmul.f32 0.01, %v152_v24  ;;  %s247_s2 = scalar_lea.vmem %s170_s6, 256  ;;  %p252_p1 = scmp.lt.s32.totalorder %s170_s6, %s170_s6 }
   0x9   :  { %v32_v18 = vld [vmem:[#allocation2] sm:$0xff]  ;;  %v157_v26 = vsub.s32 0, %v156_v22  ;;  %p248_p0 = scmp.ne.s32.totalorder %s170_s6, %s247_s2  ;;  %p253_p2 = scmp.lt.s32.totalorder %s247_s2, %s247_s2 }
   0xb   :  { %v158_v27 = vrot.slane %v153_v25, %v157_v26  ;;  %p254_p3 = por %p253_p2, %p252_p1 }
   0xd   :  { %230 = vmatpush3.bf16.xpose.msk.msra.mxu0 %vm306_vm2, %v225_v7  ;;  %p255_p4 = pnand %p254_p3, %p248_p0 }
   0xe   :  { %233 = vmatprep.subr.msk.bf16.mxu0 %vm306_vm2, %v231_v11 }
  0x15   :  { %236 = vmatpush3.bf16.xpose.msk.msra.mxu0 %vm306_vm2, %v231_v11 }
  0x16   :  { %239 = vmatprep.subr.msk.bf16.mxu0 %vm306_vm2, %v237_v14 }
  0x1d   :  { %242 = vmatpush3.bf16.xpose.msk.msra.mxu0 %vm306_vm2, %v237_v14 }
  0x24   :  { %217 = vmatmul.mubr.msk.f32.vlgmr.msra.gmra.mrb[0].mxu0 %vm34_vm0, %v23_v15 }
  0xf7   :  { %v218_v19 = vpop.f32.mrb[0].mxu0 }
  0xf8   :  { %v141_v20 = vadd.f32 %v218_v19, %v33_v17  ;;  %v131_v21 = vpop.f32.mrb[1].mxu0 }
  0xf9   :  { %v140_v23 = vadd.f32 %v131_v21, %v32_v18 }
  0xfa   :  { %144 = vst.msk [vmem:[#allocation2 + $0x8] sm:$0xff] %vm19_vm1, %v141_v20 }
  0xfb   :  { %143 = vst.msk [vmem:[#allocation2] sm:$0xff] %vm19_vm1, %v140_v23 }
 0x101   :  { %v149_v28 = vld [vmem:[#allocation2 + $0x8] sm:$0xff] }
 0x102   :  { %v148_v29 = vld [vmem:[#allocation2] sm:$0xff]  ;;  %v151_v30 = vmul.f32 0.0017677669, %v149_v28 }
 0x103   :  { %v150_v31 = vmul.f32 0.0017677669, %v148_v29 }
 0x104   :  { %v161_v32 = vadd.f32 %v158_v27, %v151_v30 }
 0x105   :  { %v160_v33 = vadd.f32 %v158_v27, %v150_v31 }
 0x106   :  { %163 = vst.msk [vmem:[#allocation3 + $0x8] sm:$0xff] %vm19_vm1, %v161_v32 }
 0x107   :  { %162 = vst.msk [vmem:[#allocation3] sm:$0xff] %vm19_vm1, %v160_v33 }
 0x108   :  { %258 = shalt.err (!%p255_p4)
}
 0x109   :  { %s259_s9 = scalar_lea.hbm %s373_s3, 256 }
 0x10a   :  { %p260_p5 = scmp.ne.s32.totalorder %s373_s3, %s259_s9  ;;  %p263_p6 = scmp.lt.u32.totalorder %s259_s9, %s373_s3 }
 0x10c   :  { %p265_p7 = pnand %p263_p6, %p260_p5 }
 0x10e   :  { %268 = shalt.err (!%p265_p7)
}
 0x10f   :  { %s273_s14 = smov 128   ;;  %s274_s15 = smov 8  }
 0x110   :  { %175 = dma.vmem_to_hbm [thread:$0]  %s170_s6, 256, %s373_s3, [#allocation4], %s273_s14, %s273_s14, %s274_s15  }
 0x111   :  { %269 = dma.done.wait [#allocation4], 256  }
 0x112   :  { %270 = vsyncadd [#allocation4], 4294967040 }
 0x113   :  { %179 = vsyncpa [#allocation4], 1 }

</bundles_post_ra>
